<compile_context>
chip_gen: v7x
topology: tpu7x:2x2x1
jax: 0.10.0
libtpu: 0.0.40
codegen_flags: <defaults>
</compile_context>

<pallas_src>
import functools
import math

import jax
import jax.numpy as jnp
from jax import lax
from jax.experimental import pallas as pl
from jax.experimental.pallas import tpu as pltpu

_EPS = 1e-12        # F.normalize default eps


def _round_up(n, m):
    return ((n + m - 1) // m) * m


def _device_kind():
    try:
        return jax.devices()[0].device_kind.lower()
    except Exception:  # pragma: no cover - defensive
        return ""


def _vmem_budget_bytes():
    """~75% of physical VMEM, derived per-generation; used for BOTH the tile
    chooser and vmem_limit_bytes so the two never disagree."""
    cap = None
    try:
        info = pltpu.get_tpu_info()
        cap = getattr(info, "vmem_capacity_bytes", None)
    except Exception:
        cap = None
    if not cap:
        kind = _device_kind()
        if "v5" in kind or "v6" in kind:
            cap = 128 * 1024 * 1024           # v5e / v6e
        else:
            cap = 64 * 1024 * 1024            # v7x or unknown: conservative
    return int(cap) * 3 // 4


def _l2_normalize_rows(v):
    ss = jnp.sum(v * v, axis=1, keepdims=True)
    # x / max(||x||, eps)  ==  x * rsqrt(max(||x||^2, eps^2))   (EUP rsqrt, no divide)
    return v * lax.rsqrt(jnp.maximum(ss, _EPS * _EPS))


# --------------------------------------------------------------------------- #
# kernel 1a: row-tiled memory normalization (+ optional bf16 MXU copy)
# --------------------------------------------------------------------------- #
def _norm_mem_kernel(w_ref, *out_refs):
    wn = _l2_normalize_rows(w_ref[...].astype(jnp.float32))
    for r in out_refs:
        r[...] = wn.astype(r.dtype)


# --------------------------------------------------------------------------- #
# kernel 1b: tiled align = wn @ wn.T  (f32 accumulator scratch)
# --------------------------------------------------------------------------- #
def _align_kernel(a_ref, b_ref, o_ref, acc_ref):
    @pl.when(pl.program_id(2) == 0)
    def _init():
        acc_ref[...] = jnp.zeros_like(acc_ref)

    # contract last dims directly (feeds MXU without an XLU transpose)
    acc_ref[...] += lax.dot_general(
        a_ref[...], b_ref[...], (((1,), (1,)), ((), ())),
        preferred_element_type=jnp.float32)

    @pl.when(pl.program_id(2) == pl.num_programs(2) - 1)
    def _fin():
        o_ref[...] = acc_ref[...]


# --------------------------------------------------------------------------- #
# kernel 2: T-tiled attention against the resident normalized memory
# --------------------------------------------------------------------------- #
def _attend_kernel(x_ref, w_ref, out_ref, att_ref, *, m_valid, m_pad, approx, exp_dtype):
    x = x_ref[...].astype(jnp.float32)
    xn = _l2_normalize_rows(x)

    w = w_ref[...]                                   # (M_pad, S_pad) resident, f32/bf16
    # logits = xn @ w.T via last-dim contraction (no explicit transpose).
    logits = lax.dot_general(xn.astype(w.dtype), w, (((1,), (1,)), ((), ())),
                             preferred_element_type=jnp.float32)

    # NOTE: no max-subtraction.  Both query and memory are L2-normalized so
    # logits are bounded in [-1, 1] and exp cannot overflow.  If the
    # normalize_query / normalize_memory flags are ever made configurable,
    # re-introduce the running-max pass.
    if exp_dtype is not None:
        e = jnp.exp(logits.astype(exp_dtype))        # bf16 exp on v6e/v7x fast path
    else:
        e = jnp.exp(logits)

    if m_pad > m_valid:                              # mask padded (zero) memory slots
        col = lax.broadcasted_iota(jnp.int32, e.shape, 1)
        e = jnp.where(col < m_valid, e, jnp.zeros_like(e))

    denom = jnp.sum(e.astype(jnp.float32), axis=1, keepdims=True)
    # approx=True -> att rows sum to 1 only to ~1e-3/1e-4 relative accuracy.
    inv = pl.reciprocal(denom, approx=approx)
    att = e * inv.astype(e.dtype)                    # bf16 on fast path, f32 on exact

    out = jnp.dot(att.astype(w.dtype), w, preferred_element_type=jnp.float32)

    out_ref[...] = out.astype(out_ref.dtype)
    att_ref[...] = att.astype(att_ref.dtype)


# --------------------------------------------------------------------------- #
# tile choosers
# --------------------------------------------------------------------------- #
def _choose_tile_t(T, S_pad, M_pad, mx_bytes, att_bytes, budget):
    """Pick grid count first, then a balanced row tile (feedback items 1/2/5/6)."""
    resident = M_pad * S_pad * mx_bytes              # single-buffered resident memory
    per_row = 2 * S_pad * 4                          # x tile (double-buffered, f32)
    per_row += 2 * S_pad * 4                         # out tile (double-buffered, f32)
    per_row += 2 * M_pad * att_bytes                 # att tile (double-buffered)
    per_row += 4 * (S_pad + M_pad) * 4               # rough in-kernel f32 temporaries
    avail = max(budget - resident, per_row * 8)
    tile_max = max(8, min(2048, (avail // per_row) // 8 * 8))
    if T >= 16:
        # >= 2 grid steps so v7x's two TensorCores both get work (harmless on 1-TC chips)
        tile_max = min(tile_max, _round_up(pl.cdiv(T, 2), 8))
    n = pl.cdiv(T, tile_max)                         # grid count first ...
    tile = _round_up(pl.cdiv(T, n), 8)               # ... then balance the tile
    return tile, n


def _pick_row_tile(n_pad, per_row_bytes, budget):
    """Largest power-of-two-of-128 row tile dividing n_pad that fits the budget."""
    tile = 128
    while (tile * 2 <= n_pad and n_pad % (tile * 2) == 0
           and (tile * 2) * per_row_bytes <= budget):
        tile *= 2
    return min(tile, n_pad)


def _divisor_tile(n_pad, cap):
    t = 128
    while t * 2 <= cap and n_pad % (t * 2) == 0:
        t *= 2
    return min(t, n_pad)


# --------------------------------------------------------------------------- #
# public wrapper
# --------------------------------------------------------------------------- #
def memory_unit_channelwise(x, weight, *, fast_math=True, tile_t=None):
    """x: (T, spatial_dim), weight: (mem_dim, spatial_dim) -> dict of outputs.

    fast_math=True  -> bf16 MXU operands (f32 accumulation), bf16 exp on v6e/v7x,
                       EUP approx reciprocal, bf16 att writeback.
    fast_math=False -> exact f32 path (tight vs the PyTorch reference, f32 att).
    """
    T, S = x.shape
    M, S2 = weight.shape
    assert S == S2, "input feature dim must equal spatial_dim"

    S_pad = _round_up(S, 128)
    M_pad = _round_up(M, 128)

    budget = _vmem_budget_bytes()
    kind = _device_kind()

    mx_dtype = jnp.bfloat16 if fast_math else jnp.float32
    mx_bytes = 2 if fast_math else 4
    att_dtype = jnp.bfloat16 if fast_math else jnp.float32
    att_bytes = 2 if fast_math else 4
    # bf16 exp only where the EUP supports bf16 (v6e / v7x); v5e has no bf16 EUP.
    exp_dtype = jnp.bfloat16 if (fast_math and "v5" not in kind) else None

    w_p = weight
    if (M_pad, S_pad) != (M, S):
        w_p = jnp.pad(weight, ((0, M_pad - M), (0, S_pad - S)))

    # ---- kernel 1a: row-tiled memory normalization ---------------------------
    per_row_1a = S_pad * (24 + 2 * mx_bytes)
    tile_m = _pick_row_tile(M_pad, per_row_1a, budget)

    pm_struct = jax.ShapeDtypeStruct((M_pad, S_pad), jnp.float32)
    row_spec = pl.BlockSpec((tile_m, S_pad), lambda i: (i, 0))
    if fast_math:
        out_shape_1a = (pm_struct, jax.ShapeDtypeStruct((M_pad, S_pad), mx_dtype))
        out_specs_1a = (row_spec, pl.BlockSpec((tile_m, S_pad), lambda i: (i, 0)))
    else:
        # exact path: skip the redundant MXU-dtype copy; pm is reused directly.
        out_shape_1a = (pm_struct,)
        out_specs_1a = (row_spec,)

    norm_out = pl.pallas_call(
        _norm_mem_kernel,
        out_shape=out_shape_1a,
        grid=(M_pad // tile_m,),
        in_specs=[pl.BlockSpec((tile_m, S_pad), lambda i: (i, 0))],
        out_specs=out_specs_1a,
        compiler_params=pltpu.CompilerParams(
            dimension_semantics=("parallel",), vmem_limit_bytes=budget),
    )(w_p)
    pm_p = norm_out[0]
    mem_mx = norm_out[1] if fast_math else pm_p

    # ---- kernel 1b: tiled align = wn @ wn.T ----------------------------------
    tm = _divisor_tile(M_pad, 512)
    tk = _divisor_tile(S_pad, 1024)
    align_p = pl.pallas_call(
        _align_kernel,
        out_shape=jax.ShapeDtypeStruct((M_pad, M_pad), jnp.float32),
        grid=(M_pad // tm, M_pad // tm, S_pad // tk),
        in_specs=[pl.BlockSpec((tm, tk), lambda i, j, k: (i, k)),
                  pl.BlockSpec((tm, tk), lambda i, j, k: (j, k))],
        out_specs=pl.BlockSpec((tm, tm), lambda i, j, k: (i, j)),
        scratch_shapes=[pltpu.VMEM((tm, tm), jnp.float32)],
        compiler_params=pltpu.CompilerParams(
            dimension_semantics=("parallel", "parallel", "arbitrary"),
            vmem_limit_bytes=budget),
    )(mem_mx, mem_mx)

    # ---- kernel 2: attention, gridded over the T (query-row) axis ------------
    if tile_t is not None:
        tile = max(8, _round_up(int(tile_t), 8))
        n_steps = pl.cdiv(T, tile)
    else:
        tile, n_steps = _choose_tile_t(T, S_pad, M_pad, mx_bytes, att_bytes, budget)
    T_pad = tile * n_steps

    x_p = x
    if (T_pad, S_pad) != (T, S):
        x_p = jnp.pad(x, ((0, T_pad - T), (0, S_pad - S)))

    kernel = functools.partial(_attend_kernel, m_valid=M, m_pad=M_pad,
                               approx=fast_math, exp_dtype=exp_dtype)
    out_p, att_p = pl.pallas_call(
        kernel,
        out_shape=(
            jax.ShapeDtypeStruct((T_pad, S_pad), jnp.float32),   # output
            jax.ShapeDtypeStruct((T_pad, M_pad), att_dtype),     # att (bf16 on fast path)
        ),
        grid=(n_steps,),
        in_specs=[
            pl.BlockSpec((tile, S_pad), lambda i: (i, 0)),        # query tile
            # resident normalized memory: whole-array VMEM operand -> copied in
            # once, single-buffered, no per-grid-step DMA.
            pl.BlockSpec(memory_space=pltpu.MemorySpace.VMEM),
        ],
        out_specs=(
            pl.BlockSpec((tile, S_pad), lambda i: (i, 0)),
            pl.BlockSpec((tile, M_pad), lambda i: (i, 0)),
        ),
        compiler_params=pltpu.CompilerParams(
            dimension_semantics=("parallel",),   # shard T tiles across TCs (v7x megacore)
            vmem_limit_bytes=budget),
    )(x_p, mem_mx)

    return {
        "output": out_p[:T, :S],
        # NOTE: att is bf16 on the fast path (halves the largest HBM writeback);
        # its rows sum to 1 only approximately (approx reciprocal + bf16).
        "att": att_p[:T, :M],
        "mem_fea_align": align_p[:M, :M],
        "processed_memory": pm_p[:M, :S],
    }


def _reference_jax(x, weight):
    """Pure-JAX reference mirroring the PyTorch forward (for validation)."""
    xn = x / jnp.maximum(jnp.linalg.norm(x, axis=1, keepdims=True), _EPS)
    wn = weight / jnp.maximum(jnp.linalg.norm(weight, axis=1, keepdims=True), _EPS)
    att = jax.nn.softmax(xn @ wn.T, axis=1)
    return {
        "output": att @ wn,
        "att": att,
        "mem_fea_align": wn @ wn.T,
        "processed_memory": wn,
    }


if __name__ == "__main__":
    # Small shapes consistent with the module's forward.
    T = 16            # number of query vectors (e.g. channels flattened over batch)
    spatial_dim = 64
    mem_dim = 32

    key = jax.random.PRNGKey(0)
    k_x, k_w = jax.random.split(key)

    x = jax.random.normal(k_x, (T, spatial_dim), dtype=jnp.float32)

    # Deterministic init matching reset_parameters(): U(-stdv, stdv), stdv = 1/sqrt(S)
    stdv = 1.0 / math.sqrt(spatial_dim)
    weight = jax.random.uniform(
        k_w, (mem_dim, spatial_dim), dtype=jnp.float32, minval=-stdv, maxval=stdv)

    ref = _reference_jax(x, weight)
    keys = ("output", "att", "mem_fea_align", "processed_memory")

    # Exact path (f32 operands, exact reciprocal, f32 att): tight tolerance.
    exact = memory_unit_channelwise(x, weight, fast_math=False)
    jax.block_until_ready(exact)
    for k in keys:
        assert jnp.allclose(exact[k], ref[k], atol=1e-5, rtol=1e-5), f"exact path mismatch: {k}"

    # Fast path (bf16 MXU operands, bf16 exp, approx reciprocal, bf16 att): relaxed.
    fast = memory_unit_channelwise(x, weight, fast_math=True)
    jax.block_until_ready(fast)
    for k in keys:
        got = fast[k].astype(jnp.float32)
        assert jnp.allclose(got, ref[k], atol=1e-2, rtol=1e-2), f"fast path mismatch: {k}"

    print("KERNEL_OK")
</pallas_src>

<mosaic_0001>
module attributes {stable_mosaic.version = 11 : i64} {
  func.func @_norm_mem_kernel(%arg0: i32, %arg1: memref<128x128xf32, #tpu.memory_space<vmem>>, %arg2: memref<128x128xf32, #tpu.memory_space<vmem>>) attributes {dimension_semantics = [#tpu.dimension_semantics<parallel>], iteration_bounds = array<i64: 1>, scalar_prefetch = 0 : i64, scratch_operands = 0 : i64, tpu.core_type = #tpu.core_type<tc>, window_params = [{transform_indices = @transform_0, window_bounds = array<i64: 128, 128>}, {transform_indices = @transform_1, window_bounds = array<i64: 128, 128>}]} {
    %c0 = arith.constant 0 : index
    %c0_0 = arith.constant 0 : index
    %0 = vector.load %arg1[%c0, %c0_0] : memref<128x128xf32, #tpu.memory_space<vmem>>, vector<128x128xf32>
    %1 = arith.mulf %0, %0 : vector<128x128xf32>
    %cst = arith.constant dense<0.000000e+00> : vector<128xf32>
    %2 = vector.multi_reduction <add>, %1, %cst [1] : vector<128x128xf32> to vector<128xf32>
    %3 = vector.shape_cast %2 : vector<128xf32> to vector<128x1xf32>
    %cst_1 = arith.constant 1.000000e-24 : f32
    %4 = vector.broadcast %cst_1 : f32 to vector<128x1xf32>
    %5 = arith.maximumf %3, %4 : vector<128x1xf32>
    %6 = math.rsqrt %5 : vector<128x1xf32>
    %7 = vector.broadcast %6 : vector<128x1xf32> to vector<128x128xf32>
    %8 = arith.mulf %0, %7 : vector<128x128xf32>
    %c0_2 = arith.constant 0 : index
    %c0_3 = arith.constant 0 : index
    %9 = vector.load %arg2[%c0_2, %c0_3] : memref<128x128xf32, #tpu.memory_space<vmem>>, vector<128x128xf32>
    tpu.vector_store %arg2[%c0_2, %c0_3], %8 {strides = array<i32>} : memref<128x128xf32, #tpu.memory_space<vmem>>, vector<128x128xf32>,
    return
  }
  func.func @transform_0(%arg0: i32) -> (i32, i32) {
    %c0_i32 = arith.constant 0 : i32
    %c0_i32_0 = arith.constant 0 : i32
    return %arg0, %c0_i32 : i32, i32
  }
  func.func @transform_1(%arg0: i32) -> (i32, i32) {
    %c0_i32 = arith.constant 0 : i32
    %c0_i32_0 = arith.constant 0 : i32
    return %arg0, %c0_i32 : i32, i32
  }
}

</mosaic_0001>

<bundles_post_ra>
// kernel: tpu_custom_call.1
= control target key start
LH: loop header
LB: loop body
LE: loop exit
PB: predicated region body
PF: predicated region fallthrough
CT: control target
= control target key end

     0   :  { %6 = vsyncpa [#allocation3], 0  ;;  %s376_s0 = inlined_call_operand.hbm [shape: f32[128,128], index: 0, kind: input, shape index: {}]   ;;  %s377_s1 = inlined_call_operand.hbm [shape: f32[128,128], index: 1, kind: output, shape index: {}]  }
   0x1   :  { %7 = vsyncpa [#allocation4], 0  ;;  %s252_s6 = smov [#allocation2]   ;;  %s204_s10 = scalar_lea.hbm %s376_s0, 2048 }
   0x2   :  { %s13_s7 = sshll.u32 %s252_s6, 4  ;;  %p205_p0 = scmp.ne.s32.totalorder %s376_s0, %s204_s10  ;;  %s14_s7 = int_to_ptr.vmem [resolvable:$true] %s13_s7 }
   0x3   :  { %p208_p1 = scmp.lt.u32.totalorder %s204_s10, %s376_s0 }
   0x5   :  { %p210_p2 = pnand %p208_p1, %p205_p0 }
   0x7   :  { %213 = shalt.err (!%p210_p2)
}
   0x8   :  { %s214_s15 = scalar_lea.vmem %s14_s7, 2048  ;;  %p219_p4 = scmp.lt.s32.totalorder %s14_s7, %s14_s7 }
   0x9   :  { %p215_p3 = scmp.ne.s32.totalorder %s14_s7, %s214_s15  ;;  %p220_p5 = scmp.lt.s32.totalorder %s214_s15, %s214_s15 }
   0xb   :  { %p221_p6 = por %p220_p5, %p219_p4 }
   0xd   :  { %p222_p7 = pnand %p221_p6, %p215_p3 }
   0xf   :  { %225 = shalt.err (!%p222_p7)
}
  0x10   :  { %s253_s16 = smov 128   ;;  %s254_s17 = smov 8  }
  0x11   :  { %19 = dma.hbm_to_vmem [thread:$0]  %s376_s0, 2048, %s14_s7, [#allocation3], %s253_s16, %s253_s16, %s254_s17  }
  0x12   :  { %248 = dma.done.wait [#allocation3], 2048  }
  0x13   :  { %249 = vsyncadd [#allocation3], 4294965248  ;;  %v281_v0 = vld [vmem:[#allocation2 + $0x10] sm:$0xff]  ;;  %v283_v1 = vld [vmem:[#allocation2] sm:$0xff]  ;;  %s255_s0 = smov [#allocation5]  }
  0x14   :  { %v285_v2 = vld [vmem:[#allocation2 + $0x18] sm:$0xff]  ;;  %v41_v3 = vmul.f32 %v281_v0, %v281_v0  ;;  %v39_v4 = vmul.f32 %v283_v1, %v283_v1  ;;  %v291_v5 = vld [vmem:[#allocation2 + $0x8] sm:$0xff]  ;;  %v299_v9 = vld [vmem:[#allocation2 + $0x20] sm:$0xff]  ;;  %s156_s20 = sshll.u32 %s255_s0, 4  ;;  %s157_s20 = int_to_ptr.vmem [resolvable:$true] %s156_s20 }
  0x15   :  { %v42_v6 = vmul.f32 %v285_v2, %v285_v2  ;;  %v40_v7 = vmul.f32 %v291_v5, %v291_v5  ;;  %v297_v8 = vld [vmem:[#allocation2 + $0x28] sm:$0xff]  ;;  %v43_v11 = vmul.f32 %v299_v9, %v299_v9  ;;  %v305_v12 = vld [vmem:[#allocation2 + $0x38] sm:$0xff]  ;;  %v307_v13 = vld [vmem:[#allocation2 + $0x30] sm:$0xff]  ;;  %s226_s21 = scalar_lea.vmem %s157_s20, 2048  ;;  %p231_p9 = scmp.lt.s32.totalorder %s157_s20, %s157_s20 }
  0x16   :  { %59 = vadd.xlane.f32.xlu1 %v41_v3  ;;  %55 = vadd.xlane.f32.xlu0 %v39_v4  ;;  %v44_v10 = vmul.f32 %v297_v8, %v297_v8  ;;  %v46_v14 = vmul.f32 %v305_v12, %v305_v12  ;;  %v45_v15 = vmul.f32 %v307_v13, %v307_v13  ;;  %v313_v16 = vld [vmem:[#allocation2 + $0x48] sm:$0xff]  ;;  %v315_v17 = vld [vmem:[#allocation2 + $0x40] sm:$0xff]  ;;  %v321_v20 = vld [vmem:[#allocation2 + $0x58] sm:$0xff]  ;;  %p227_p8 = scmp.ne.s32.totalorder %s157_s20, %s226_s21  ;;  %p232_p10 = scmp.lt.s32.totalorder %s226_s21, %s226_s21 }
  0x17   :  { %v48_v18 = vmul.f32 %v313_v16, %v313_v16  ;;  %v47_v19 = vmul.f32 %v315_v17, %v315_v17  ;;  %v323_v21 = vld [vmem:[#allocation2 + $0x50] sm:$0xff]  ;;  %v50_v22 = vmul.f32 %v321_v20, %v321_v20  ;;  %v329_v24 = vld [vmem:[#allocation2 + $0x68] sm:$0xff]  ;;  %v331_v25 = vld [vmem:[#allocation2 + $0x60] sm:$0xff] }
  0x18   :  { %v49_v23 = vmul.f32 %v323_v21, %v323_v21  ;;  %v52_v26 = vmul.f32 %v329_v24, %v329_v24  ;;  %v51_v27 = vmul.f32 %v331_v25, %v331_v25  ;;  %v337_v28 = vld [vmem:[#allocation2 + $0x78] sm:$0xff]  ;;  %v339_v29 = vld [vmem:[#allocation2 + $0x70] sm:$0xff]  ;;  %p233_p11 = por %p232_p10, %p231_p9 }
  0x19   :  { %v54_v30 = vmul.f32 %v337_v28, %v337_v28  ;;  %v53_v31 = vmul.f32 %v339_v29, %v339_v29 }
  0x1a   :  { %61 = vadd.xlane.f32.xlu1 %v42_v6  ;;  %57 = vadd.xlane.f32.xlu0 %v40_v7  ;;  %p234_p12 = pnand %p233_p11, %p227_p8 }
  0x1e   :  { %65 = vadd.xlane.f32.xlu1 %v44_v10  ;;  %63 = vadd.xlane.f32.xlu0 %v43_v11 }
  0x22   :  { %69 = vadd.xlane.f32.xlu1 %v46_v14  ;;  %67 = vadd.xlane.f32.xlu0 %v45_v15 }
  0x26   :  { %73 = vadd.xlane.f32.xlu1 %v48_v18  ;;  %71 = vadd.xlane.f32.xlu0 %v47_v19 }
  0x2a   :  { %77 = vadd.xlane.f32.xlu1 %v50_v22  ;;  %75 = vadd.xlane.f32.xlu0 %v49_v23 }
  0x2e   :  { %81 = vadd.xlane.f32.xlu1 %v52_v26  ;;  %79 = vadd.xlane.f32.xlu0 %v51_v27 }
  0x32   :  { %85 = vadd.xlane.f32.xlu1 %v54_v30  ;;  %83 = vadd.xlane.f32.xlu0 %v53_v31 }
  0xa3   :  { %v60_v32 = vpop.xlane.xlu1 %59  ;;  %v56_v33 = vpop.xlane.xlu0 %55 }
  0xa4   :  { %v89_v34 = vmax.f32 %v60_v32, 1e-24  ;;  %v87_v35 = vmax.f32 %v56_v33, 1e-24 }
  0xa6   :  { %172 = vrsqrt.f32 %v89_v34 }
  0xa7   :  { %174 = vrsqrt.f32 %v87_v35  ;;  %v62_v36 = vpop.xlane.xlu1 %61  ;;  %v58_v37 = vpop.xlane.xlu0 %57 }
  0xa8   :  { %v90_v38 = vmax.f32 %v62_v36, 1e-24  ;;  %v88_v39 = vmax.f32 %v58_v37, 1e-24 }
  0xaa   :  { %176 = vrsqrt.f32 %v90_v38 }
  0xab   :  { %178 = vrsqrt.f32 %v88_v39  ;;  %v66_v40 = vpop.xlane.xlu1 %65  ;;  %v64_v41 = vpop.xlane.xlu0 %63 }
  0xac   :  { %v92_v42 = vmax.f32 %v66_v40, 1e-24  ;;  %v91_v43 = vmax.f32 %v64_v41, 1e-24 }
  0xae   :  { %180 = vrsqrt.f32 %v92_v42 }
  0xaf   :  { %182 = vrsqrt.f32 %v91_v43  ;;  %v70_v44 = vpop.xlane.xlu1 %69  ;;  %v68_v45 = vpop.xlane.xlu0 %67 }
  0xb0   :  { %v173_v46 = vpop.eup %172  ;;  %v94_v47 = vmax.f32 %v70_v44, 1e-24  ;;  %v93_v48 = vmax.f32 %v68_v45, 1e-24 }
  0xb1   :  { %v175_v49 = vpop.eup %174  ;;  %v121_v50 = vmul.f32 %v173_v46, %v281_v0 }
  0xb2   :  { %v119_v51 = vmul.f32 %v175_v49, %v283_v1  ;;  %184 = vrsqrt.f32 %v94_v47 }
  0xb3   :  { %137 = vst [vmem:[#allocation5 + $0x10] sm:$0xff] %v121_v50  ;;  %186 = vrsqrt.f32 %v93_v48  ;;  %v74_v52 = vpop.xlane.xlu1 %73  ;;  %v72_v53 = vpop.xlane.xlu0 %71 }
  0xb4   :  { %v177_v54 = vpop.eup %176  ;;  %135 = vst [vmem:[#allocation5] sm:$0xff] %v119_v51  ;;  %v96_v55 = vmax.f32 %v74_v52, 1e-24  ;;  %v95_v56 = vmax.f32 %v72_v53, 1e-24 }
  0xb5   :  { %v179_v57 = vpop.eup %178  ;;  %v122_v58 = vmul.f32 %v177_v54, %v285_v2 }
  0xb6   :  { %v120_v59 = vmul.f32 %v179_v57, %v291_v5  ;;  %188 = vrsqrt.f32 %v96_v55 }
  0xb7   :  { %138 = vst [vmem:[#allocation5 + $0x18] sm:$0xff] %v122_v58  ;;  %190 = vrsqrt.f32 %v95_v56  ;;  %v78_v60 = vpop.xlane.xlu1 %77  ;;  %v76_v61 = vpop.xlane.xlu0 %75 }
  0xb8   :  { %v181_v62 = vpop.eup %180  ;;  %136 = vst [vmem:[#allocation5 + $0x8] sm:$0xff] %v120_v59  ;;  %v98_v63 = vmax.f32 %v78_v60, 1e-24  ;;  %v97_v0 = vmax.f32 %v76_v61, 1e-24 }
  0xb9   :  { %v183_v1 = vpop.eup %182  ;;  %v124_v3 = vmul.f32 %v181_v62, %v297_v8 }
  0xba   :  { %v123_v4 = vmul.f32 %v183_v1, %v299_v9  ;;  %192 = vrsqrt.f32 %v98_v63 }
  0xbb   :  { %140 = vst [vmem:[#allocation5 + $0x28] sm:$0xff] %v124_v3  ;;  %194 = vrsqrt.f32 %v97_v0  ;;  %v82_v2 = vpop.xlane.xlu1 %81  ;;  %v80_v6 = vpop.xlane.xlu0 %79 }
  0xbc   :  { %v185_v5 = vpop.eup %184  ;;  %139 = vst [vmem:[#allocation5 + $0x20] sm:$0xff] %v123_v4  ;;  %v100_v7 = vmax.f32 %v82_v2, 1e-24  ;;  %v99_v10 = vmax.f32 %v80_v6, 1e-24 }
  0xbd   :  { %v187_v11 = vpop.eup %186  ;;  %v126_v14 = vmul.f32 %v185_v5, %v305_v12 }
  0xbe   :  { %v125_v15 = vmul.f32 %v187_v11, %v307_v13  ;;  %196 = vrsqrt.f32 %v100_v7 }
  0xbf   :  { %142 = vst [vmem:[#allocation5 + $0x38] sm:$0xff] %v126_v14  ;;  %198 = vrsqrt.f32 %v99_v10  ;;  %v86_v8 = vpop.xlane.xlu1 %85  ;;  %v84_v18 = vpop.xlane.xlu0 %83 }
  0xc0   :  { %v189_v9 = vpop.eup %188  ;;  %141 = vst [vmem:[#allocation5 + $0x30] sm:$0xff] %v125_v15  ;;  %v102_v19 = vmax.f32 %v86_v8, 1e-24  ;;  %v101_v22 = vmax.f32 %v84_v18, 1e-24 }
  0xc1   :  { %v191_v23 = vpop.eup %190  ;;  %v128_v26 = vmul.f32 %v189_v9, %v313_v16 }
  0xc2   :  { %v127_v27 = vmul.f32 %v191_v23, %v315_v17  ;;  %200 = vrsqrt.f32 %v102_v19 }
  0xc3   :  { %144 = vst [vmem:[#allocation5 + $0x48] sm:$0xff] %v128_v26  ;;  %202 = vrsqrt.f32 %v101_v22 }
  0xc4   :  { %v193_v12 = vpop.eup %192  ;;  %143 = vst [vmem:[#allocation5 + $0x40] sm:$0xff] %v127_v27 }
  0xc5   :  { %v195_v13 = vpop.eup %194  ;;  %v130_v30 = vmul.f32 %v193_v12, %v321_v20 }
  0xc6   :  { %v129_v31 = vmul.f32 %v195_v13, %v323_v21 }
  0xc7   :  { %146 = vst [vmem:[#allocation5 + $0x58] sm:$0xff] %v130_v30 }
  0xc8   :  { %v197_v32 = vpop.eup %196  ;;  %145 = vst [vmem:[#allocation5 + $0x50] sm:$0xff] %v129_v31 }
  0xc9   :  { %v199_v33 = vpop.eup %198  ;;  %v132_v34 = vmul.f32 %v197_v32, %v329_v24 }
  0xca   :  { %v131_v16 = vmul.f32 %v199_v33, %v331_v25 }
  0xcb   :  { %148 = vst [vmem:[#allocation5 + $0x68] sm:$0xff] %v132_v34 }
  0xcc   :  { %v201_v17 = vpop.eup %200  ;;  %147 = vst [vmem:[#allocation5 + $0x60] sm:$0xff] %v131_v16 }
  0xcd   :  { %v203_v35 = vpop.eup %202  ;;  %v134_v36 = vmul.f32 %v201_v17, %v337_v28 }
  0xce   :  { %v133_v20 = vmul.f32 %v203_v35, %v339_v29 }
  0xcf   :  { %150 = vst [vmem:[#allocation5 + $0x78] sm:$0xff] %v134_v36 }
  0xd0   :  { %149 = vst [vmem:[#allocation5 + $0x70] sm:$0xff] %v133_v20 }
  0xd1   :  { %237 = shalt.err (!%p234_p12)
}
  0xd2   :  { %s238_s24 = scalar_lea.hbm %s377_s1, 2048 }
  0xd3   :  { %p239_p13 = scmp.ne.s32.totalorder %s377_s1, %s238_s24  ;;  %p242_p0 = scmp.lt.u32.totalorder %s238_s24, %s377_s1 }
  0xd5   :  { %p244_p1 = pnand %p242_p0, %p239_p13 }
  0xd7   :  { %247 = shalt.err (!%p244_p1)
}
  0xd8   :  { %162 = dma.vmem_to_hbm [thread:$0]  %s157_s20, 2048, %s377_s1, [#allocation4], %s253_s16, %s253_s16, %s254_s17  }
  0xd9   :  { %250 = dma.done.wait [#allocation4], 2048  }
  0xda   :  { %251 = vsyncadd [#allocation4], 4294965248 }
  0xdb   :  { %166 = vsyncpa [#allocation3], 1 }
  0xdc   :  { %167 = vsyncpa [#allocation4], 1 }

</bundles_post_ra>
